<compile_context>
chip_gen: v7x
topology: tpu7x:2x2x1
jax: 0.10.0
libtpu: 0.0.40
codegen_flags: <defaults>
</compile_context>

<pallas_src>
import functools

import jax
import jax.numpy as jnp
from jax.experimental import pallas as pl
from jax.experimental.pallas import tpu as pltpu


def _copy_kernel(x_ref, o_ref):
    # Straight contiguous copy of one (tile_rows, lanes) tile.
    o_ref[...] = x_ref[...]


def _resolve_shape(total, shape):
    """PyTorch .view(*shape) semantics, including a single -1."""
    shape = list(shape)
    if shape.count(-1) > 1:
        raise ValueError("only one -1 allowed in view shape")
    if -1 in shape:
        known = 1
        for s in shape:
            if s != -1:
                known *= s
        if known == 0 or total % known != 0:
            raise ValueError(f"cannot view {total} elements as {shape}")
        shape[shape.index(-1)] = total // known
    else:
        prod = 1
        for s in shape:
            prod *= s
        if prod != total:
            raise ValueError(f"cannot view {total} elements as {shape}")
    return tuple(shape)


def _sublane_base(dtype):
    """Sublane multiple so sub-32-bit dtypes get full (packed) vregs."""
    itemsize = jnp.dtype(dtype).itemsize
    if itemsize >= 4:
        return 8
    if itemsize == 2:
        return 16
    return 32


_TARGET_TILE_BYTES = 2 * 1024 * 1024  # ~2 MiB per tile side: roofline on all gens


def _pallas_copy_2d(slab):
    """Streaming identity copy of a lane-dense 2D slab."""
    rows, lanes = slab.shape
    itemsize = jnp.dtype(slab.dtype).itemsize
    base = _sublane_base(slab.dtype)

    # Large, dtype-aware tile; if it covers all rows the block equals the full
    # second-to-last dim (always a legal block shape).
    tile_rows = max(base, (_TARGET_TILE_BYTES // (lanes * itemsize)) // base * base)
    tile_rows = min(tile_rows, rows)

    grid = (pl.cdiv(rows, tile_rows),)  # partial edge tile is clipped by Pallas

    # Double-buffered input + output tiles in flight, plus headroom; cap so a
    # v6e-tuned config never starves v7x's 64 MiB VMEM.
    in_flight = 2 * 2 * tile_rows * lanes * itemsize
    vmem_limit = int(min(48 << 20, max(in_flight + (4 << 20), 16 << 20)))

    return pl.pallas_call(
        _copy_kernel,
        out_shape=jax.ShapeDtypeStruct((rows, lanes), slab.dtype),
        grid_spec=pltpu.PrefetchScalarGridSpec(
            num_scalar_prefetch=0,
            grid=grid,
            in_specs=[pl.BlockSpec((tile_rows, lanes), lambda i: (i, 0))],
            out_specs=pl.BlockSpec((tile_rows, lanes), lambda i: (i, 0)),
        ),
        compiler_params=pltpu.CompilerParams(
            dimension_semantics=("parallel",),
            vmem_limit_bytes=vmem_limit,
        ),
        cost_estimate=pl.CostEstimate(
            flops=0,
            transcendentals=0,
            bytes_accessed=2 * rows * lanes * itemsize,
        ),
    )(slab)


def pallas_view(x, shape):
    """Equivalent of torch `x.view(*shape)` (contiguous input)."""
    total = x.size
    out_shape = _resolve_shape(total, shape)

    # Pick the widest lane dim that divides the flat size (lane-dense stores).
    lanes = None
    for cand in (1024, 512, 256, 128):
        if total % cand == 0:
            lanes = cand
            break

    if lanes is None or total == 0:
        # Misaligned / tiny / empty sizes: a contiguous view is metadata-only,
        # no data movement needed at all.
        return jnp.reshape(x, out_shape)

    rows = total // lanes
    slab = x.reshape(rows, lanes)      # metadata-only flatten (contiguous x)
    copied = _pallas_copy_2d(slab)     # single HBM pass
    return copied.reshape(out_shape)   # metadata-only reinterpretation


if __name__ == "__main__":
    key = jax.random.PRNGKey(0)
    # Input consistent with a typical NCHW conv activation: [B, C, H, W]
    x = jax.random.normal(key, (2, 4, 16, 16), dtype=jnp.float32)

    # View((2, -1)) -> flatten all but the batch dim, like the PyTorch module.
    view_fn = jax.jit(pallas_view, static_argnames="shape")
    y = view_fn(x, (2, -1))
    jax.block_until_ready(y)

    # Correctness check against plain reshape (== torch .view on contiguous x).
    y_ref = x.reshape(2, -1)
    assert y.shape == (2, 4 * 16 * 16), y.shape
    assert y.dtype == x.dtype
    assert bool(jnp.array_equal(y, y_ref))

    print("KERNEL_OK")
</pallas_src>

<mosaic_0001>
module attributes {stable_mosaic.version = 11 : i64} {
  func.func @_copy_kernel(%arg0: i32, %arg1: memref<2x1024xf32, #tpu.memory_space<vmem>>, %arg2: memref<2x1024xf32, #tpu.memory_space<vmem>>) attributes {dimension_semantics = [#tpu.dimension_semantics<parallel>], iteration_bounds = array<i64: 1>, scalar_prefetch = 0 : i64, scratch_operands = 0 : i64, tpu.core_type = #tpu.core_type<tc>, window_params = [{transform_indices = @transform_0, window_bounds = array<i64: 2, 1024>}, {transform_indices = @transform_1, window_bounds = array<i64: 2, 1024>}]} {
    %c0 = arith.constant 0 : index
    %c0_0 = arith.constant 0 : index
    %0 = vector.load %arg1[%c0, %c0_0] : memref<2x1024xf32, #tpu.memory_space<vmem>>, vector<2x1024xf32>
    %c0_1 = arith.constant 0 : index
    %c0_2 = arith.constant 0 : index
    %1 = vector.load %arg2[%c0_1, %c0_2] : memref<2x1024xf32, #tpu.memory_space<vmem>>, vector<2x1024xf32>
    tpu.vector_store %arg2[%c0_1, %c0_2], %0 {strides = array<i32>} : memref<2x1024xf32, #tpu.memory_space<vmem>>, vector<2x1024xf32>,
    return
  }
  func.func @transform_0(%arg0: i32) -> (i32, i32) {
    %c0_i32 = arith.constant 0 : i32
    %c0_i32_0 = arith.constant 0 : i32
    return %arg0, %c0_i32 : i32, i32
  }
  func.func @transform_1(%arg0: i32) -> (i32, i32) {
    %c0_i32 = arith.constant 0 : i32
    %c0_i32_0 = arith.constant 0 : i32
    return %arg0, %c0_i32 : i32, i32
  }
}

</mosaic_0001>

<bundles_post_ra>
// kernel: pallas_view.1
= control target key start
LH: loop header
LB: loop body
LE: loop exit
PB: predicated region body
PF: predicated region fallthrough
CT: control target
= control target key end

     0   :  { %s81_s0 = inlined_call_operand.vmem [shape: f32[2,1024], index: 0, kind: input, shape index: {}]   ;;  %s82_s1 = inlined_call_operand.hbm [shape: f32[2,1024], index: 1, kind: output, shape index: {}]  }
   0x1   :  { %v9_v0 = vld [vmem:[%s81_s0] sm:$0xff]  ;;  %v10_v1 = vld [vmem:[%s81_s0 + $0x8] sm:$0xff] }
   0x2   :  { %6 = vsyncpa [#allocation3], 0  ;;  %11 = vst [vmem:[#allocation2] sm:$0xff] %v9_v0  ;;  %s52_s10 = smov [#allocation2]  }
   0x3   :  { %12 = vst [vmem:[#allocation2 + $0x8] sm:$0xff] %v10_v1  ;;  %s19_s11 = sshll.u32 %s52_s10, 4  ;;  %s20_s11 = int_to_ptr.vmem [resolvable:$true] %s19_s11 }
   0x4   :  { %s28_s12 = scalar_lea.vmem %s20_s11, 256  ;;  %p33_p1 = scmp.lt.s32.totalorder %s20_s11, %s20_s11 }
   0x5   :  { %p29_p0 = scmp.ne.s32.totalorder %s20_s11, %s28_s12  ;;  %p34_p2 = scmp.lt.s32.totalorder %s28_s12, %s28_s12 }
   0x7   :  { %p35_p3 = por %p34_p2, %p33_p1 }
   0x9   :  { %p36_p4 = pnand %p35_p3, %p29_p0 }
   0xb   :  { %39 = shalt.err (!%p36_p4)
}
   0xc   :  { %s40_s15 = scalar_lea.hbm %s82_s1, 256 }
   0xd   :  { %p41_p5 = scmp.ne.s32.totalorder %s82_s1, %s40_s15  ;;  %p44_p6 = scmp.lt.u32.totalorder %s40_s15, %s82_s1 }
   0xf   :  { %p46_p7 = pnand %p44_p6, %p41_p5 }
  0x11   :  { %49 = shalt.err (!%p46_p7)
}
  0x12   :  { %22 = dma.vmem_to_hbm [thread:$0]  %s20_s11, 256, %s82_s1, [#allocation3]  }
  0x13   :  { %50 = dma.done.wait [#allocation3], 256  }
  0x14   :  { %51 = vsyncadd [#allocation3], 4294967040 }
  0x15   :  { %26 = vsyncpa [#allocation3], 1 }

</bundles_post_ra>
